<compile_context>
chip_gen: v7x
topology: tpu7x:2x2x1
jax: 0.10.0
libtpu: 0.0.40
codegen_flags: <defaults>
</compile_context>

<pallas_src>
import functools
import math

import jax
import jax.numpy as jnp
from jax.experimental import pallas as pl
from jax.experimental.pallas import tpu as pltpu

LANE = 128          # lane width
BLOCK_ROWS = 1024   # rows per grid step (512 KiB/input/block; 3 in x 2 bufs = 3 MiB VMEM)


def _wing_kernel(pred_ref, true_ref, mask_ref, loss_out_ref, msum_out_ref,
                 *, w, e, C):
    i = pl.program_id(1)

    @pl.when(i == 0)
    def _():
        loss_out_ref[...] = jnp.zeros_like(loss_out_ref)
        msum_out_ref[...] = jnp.zeros_like(msum_out_ref)

    p = pred_ref[...].astype(jnp.float32)
    t = true_ref[...].astype(jnp.float32)
    m = mask_ref[...].astype(jnp.float32)

    x = p * m
    tt = t * m
    weight = jnp.where(tt == -1.0, 0.0, 1.0)
    diff = weight * (x - tt)
    a = jnp.abs(diff)
    # Zero-padded tail: a == 0, m == 0 -> contributes 0 to both sums.
    y = jnp.where(a < w, w * jnp.log1p(a * (1.0 / e)), a - C)

    rows = pred_ref.shape[0]
    # vreg-shaped partial sums: sublane-group adds on the VPU, no XLU reduce
    # inside the hot loop.
    loss_out_ref[...] += y.reshape(rows // 8, 8, LANE).sum(axis=0)
    msum_out_ref[...] += m.reshape(rows // 8, 8, LANE).sum(axis=0)


def landmarks_loss(pred, truel, mask, w=10.0, e=2.0, alpha=1.0):
    """Pallas implementation of landmarksloss.forward(pred, truel, mask)."""
    assert pred.shape == truel.shape == mask.shape
    del alpha  # stored but unused in the PyTorch module's forward
    n = int(pred.size)
    C = w - w * math.log(1.0 + w / e)

    rows = pl.cdiv(n, LANE)
    rows8 = pl.cdiv(rows, 8) * 8            # minimal sublane-aligned row count
    TM = min(BLOCK_ROWS, rows8)             # rows per grid step (multiple of 8)
    steps = pl.cdiv(rows8, TM)
    NC = 2 if (steps >= 2 and steps % 2 == 0) else 1   # 2-way TC split (v7x)
    steps_per_core = steps // NC
    rows_padded = steps * TM
    pad = rows_padded * LANE - n

    def prep(a):
        flat = a.reshape(-1)
        if pad:
            # Ragged tail only; zero padding contributes exactly 0 to both
            # sums, so the kernel needs no per-element masking.
            flat = jnp.pad(flat, (0, pad))
        return flat.reshape(rows_padded, LANE)   # free reshape when pad == 0

    pred2d = prep(pred)
    true2d = prep(truel)
    mask2d = prep(mask)

    kernel = functools.partial(_wing_kernel, w=float(w), e=float(e), C=float(C))

    in_spec = pl.BlockSpec((TM, LANE), lambda c, i: (c * steps_per_core + i, 0))
    out_spec = pl.BlockSpec((8, LANE), lambda c, i: (c, 0))

    loss_part, msum_part = pl.pallas_call(
        kernel,
        out_shape=(
            jax.ShapeDtypeStruct((NC * 8, LANE), jnp.float32),
            jax.ShapeDtypeStruct((NC * 8, LANE), jnp.float32),
        ),
        grid_spec=pltpu.PrefetchScalarGridSpec(
            num_scalar_prefetch=0,
            grid=(NC, steps_per_core),
            in_specs=[in_spec, in_spec, in_spec],
            out_specs=[out_spec, out_spec],
        ),
        compiler_params=pltpu.CompilerParams(
            dimension_semantics=("parallel", "arbitrary"),
        ),
    )(pred2d, true2d, mask2d)

    loss_sum = jnp.sum(loss_part)
    mask_sum = jnp.sum(msum_part)
    return loss_sum / (mask_sum + 1e-13)


def _landmarks_loss_ref(pred, truel, mask, w=10.0, e=2.0):
    """Pure-JAX reference mirroring the PyTorch module."""
    C = w - w * jnp.log(1.0 + w / e)
    x = pred.astype(jnp.float32) * mask.astype(jnp.float32)
    t = truel.astype(jnp.float32) * mask.astype(jnp.float32)
    weight = jnp.where(t == -1.0, 0.0, 1.0)
    a = jnp.abs(weight * (x - t))
    y = jnp.where(a < w, w * jnp.log1p(a / e), a - C)
    return jnp.sum(y) / (jnp.sum(mask) + 1e-13)


if __name__ == "__main__":
    key = jax.random.PRNGKey(0)
    k1, k2, k3, k4 = jax.random.split(key, 4)

    shape = (2, 4, 16, 16)   # 2048 elements -> lane/sublane aligned, no pad copy
    pred = jax.random.normal(k1, shape, dtype=jnp.float32) * 5.0
    truel = jax.random.uniform(k2, shape, minval=-1.0, maxval=1.0)
    # Force some exact -1 targets to exercise the "ignore" branch of wingloss.
    truel = jnp.where(jax.random.uniform(k3, shape) > 0.9, -1.0, truel)
    mask = (jax.random.uniform(k4, shape) > 0.3).astype(jnp.float32)

    out = landmarks_loss(pred, truel, mask)
    out = jax.block_until_ready(out)

    ref = _landmarks_loss_ref(pred, truel, mask)
    assert jnp.allclose(out, ref, rtol=1e-5, atol=1e-4), (out, ref)

    print("KERNEL_OK")
</pallas_src>

<mosaic_0001>
module attributes {stable_mosaic.version = 11 : i64} {
  func.func @_wing_kernel(%arg0: i32, %arg1: i32, %arg2: memref<16x128xf32, #tpu.memory_space<vmem>>, %arg3: memref<16x128xf32, #tpu.memory_space<vmem>>, %arg4: memref<16x128xf32, #tpu.memory_space<vmem>>, %arg5: memref<8x128xf32, #tpu.memory_space<vmem>>, %arg6: memref<8x128xf32, #tpu.memory_space<vmem>>) attributes {dimension_semantics = [#tpu.dimension_semantics<parallel>, #tpu.dimension_semantics<arbitrary>], iteration_bounds = array<i64: 1, 1>, scalar_prefetch = 0 : i64, scratch_operands = 0 : i64, tpu.core_type = #tpu.core_type<tc>, window_params = [{transform_indices = @transform_0, window_bounds = array<i64: 16, 128>}, {transform_indices = @transform_1, window_bounds = array<i64: 16, 128>}, {transform_indices = @transform_2, window_bounds = array<i64: 16, 128>}, {transform_indices = @transform_3, window_bounds = array<i64: 8, 128>}, {transform_indices = @transform_4, window_bounds = array<i64: 8, 128>}]} {
    %c0_i32 = arith.constant 0 : i32
    %0 = arith.cmpi eq, %arg1, %c0_i32 : i32
    %1 = arith.extui %0 : i1 to i32
    %c0_i32_0 = arith.constant 0 : i32
    %2 = arith.cmpi ne, %1, %c0_i32_0 : i32
    scf.if %2 {
      %cst_22 = arith.constant 0.000000e+00 : f32
      %36 = vector.broadcast %cst_22 : f32 to vector<8x128xf32>
      %c0_23 = arith.constant 0 : index
      %c0_24 = arith.constant 0 : index
      %37 = vector.load %arg5[%c0_23, %c0_24] : memref<8x128xf32, #tpu.memory_space<vmem>>, vector<8x128xf32>
      tpu.vector_store %arg5[%c0_23, %c0_24], %36 {strides = array<i32>} : memref<8x128xf32, #tpu.memory_space<vmem>>, vector<8x128xf32>,
      %cst_25 = arith.constant 0.000000e+00 : f32
      %38 = vector.broadcast %cst_25 : f32 to vector<8x128xf32>
      %c0_26 = arith.constant 0 : index
      %c0_27 = arith.constant 0 : index
      %39 = vector.load %arg6[%c0_26, %c0_27] : memref<8x128xf32, #tpu.memory_space<vmem>>, vector<8x128xf32>
      tpu.vector_store %arg6[%c0_26, %c0_27], %38 {strides = array<i32>} : memref<8x128xf32, #tpu.memory_space<vmem>>, vector<8x128xf32>,
    } else {
    }
    %c0 = arith.constant 0 : index
    %c0_1 = arith.constant 0 : index
    %3 = vector.load %arg2[%c0, %c0_1] : memref<16x128xf32, #tpu.memory_space<vmem>>, vector<16x128xf32>
    %c0_2 = arith.constant 0 : index
    %c0_3 = arith.constant 0 : index
    %4 = vector.load %arg3[%c0_2, %c0_3] : memref<16x128xf32, #tpu.memory_space<vmem>>, vector<16x128xf32>
    %c0_4 = arith.constant 0 : index
    %c0_5 = arith.constant 0 : index
    %5 = vector.load %arg4[%c0_4, %c0_5] : memref<16x128xf32, #tpu.memory_space<vmem>>, vector<16x128xf32>
    %6 = arith.mulf %3, %5 : vector<16x128xf32>
    %7 = arith.mulf %4, %5 : vector<16x128xf32>
    %cst = arith.constant -1.000000e+00 : f32
    %8 = vector.broadcast %cst : f32 to vector<16x128xf32>
    %9 = arith.cmpf oeq, %7, %8 : vector<16x128xf32>
    %cst_6 = arith.constant 0.000000e+00 : f32
    %cst_7 = arith.constant 1.000000e+00 : f32
    %10 = vector.broadcast %cst_6 : f32 to vector<16x128xf32>
    %11 = vector.broadcast %cst_7 : f32 to vector<16x128xf32>
    %12 = arith.select %9, %10, %11 : vector<16x128xi1>, vector<16x128xf32>
    %13 = arith.subf %6, %7 : vector<16x128xf32>
    %14 = arith.mulf %12, %13 : vector<16x128xf32>
    %15 = math.absf %14 : vector<16x128xf32>
    %cst_8 = arith.constant 1.000000e+01 : f32
    %16 = vector.broadcast %cst_8 : f32 to vector<16x128xf32>
    %17 = arith.cmpf olt, %15, %16 : vector<16x128xf32>
    %cst_9 = arith.constant 5.000000e-01 : f32
    %18 = vector.broadcast %cst_9 : f32 to vector<16x128xf32>
    %19 = arith.mulf %15, %18 : vector<16x128xf32>
    %20 = math.log1p %19 : vector<16x128xf32>
    %cst_10 = arith.constant 1.000000e+01 : f32
    %21 = vector.broadcast %cst_10 : f32 to vector<16x128xf32>
    %22 = arith.mulf %21, %20 : vector<16x128xf32>
    %cst_11 = arith.constant -7.9175949 : f32
    %23 = vector.broadcast %cst_11 : f32 to vector<16x128xf32>
    %24 = arith.subf %15, %23 : vector<16x128xf32>
    %25 = arith.select %17, %22, %24 : vector<16x128xi1>, vector<16x128xf32>
    %c0_12 = arith.constant 0 : index
    %c0_13 = arith.constant 0 : index
    %26 = vector.load %arg5[%c0_12, %c0_13] : memref<8x128xf32, #tpu.memory_space<vmem>>, vector<8x128xf32>
    %27 = vector.shape_cast %25 : vector<16x128xf32> to vector<2x8x128xf32>
    %cst_14 = arith.constant dense<0.000000e+00> : vector<8x128xf32>
    %28 = vector.multi_reduction <add>, %27, %cst_14 [0] : vector<2x8x128xf32> to vector<8x128xf32>
    %29 = arith.addf %26, %28 : vector<8x128xf32>
    %c0_15 = arith.constant 0 : index
    %c0_16 = arith.constant 0 : index
    %30 = vector.load %arg5[%c0_15, %c0_16] : memref<8x128xf32, #tpu.memory_space<vmem>>, vector<8x128xf32>
    tpu.vector_store %arg5[%c0_15, %c0_16], %29 {strides = array<i32>} : memref<8x128xf32, #tpu.memory_space<vmem>>, vector<8x128xf32>,
    %c0_17 = arith.constant 0 : index
    %c0_18 = arith.constant 0 : index
    %31 = vector.load %arg6[%c0_17, %c0_18] : memref<8x128xf32, #tpu.memory_space<vmem>>, vector<8x128xf32>
    %32 = vector.shape_cast %5 : vector<16x128xf32> to vector<2x8x128xf32>
    %cst_19 = arith.constant dense<0.000000e+00> : vector<8x128xf32>
    %33 = vector.multi_reduction <add>, %32, %cst_19 [0] : vector<2x8x128xf32> to vector<8x128xf32>
    %34 = arith.addf %31, %33 : vector<8x128xf32>
    %c0_20 = arith.constant 0 : index
    %c0_21 = arith.constant 0 : index
    %35 = vector.load %arg6[%c0_20, %c0_21] : memref<8x128xf32, #tpu.memory_space<vmem>>, vector<8x128xf32>
    tpu.vector_store %arg6[%c0_20, %c0_21], %34 {strides = array<i32>} : memref<8x128xf32, #tpu.memory_space<vmem>>, vector<8x128xf32>,
    return
  }
  func.func @transform_0(%arg0: i32, %arg1: i32) -> (i32, i32) {
    %c1_i32 = arith.constant 1 : i32
    %0 = arith.muli %arg0, %c1_i32 : i32
    %1 = arith.addi %0, %arg1 : i32
    %c0_i32 = arith.constant 0 : i32
    %c0_i32_0 = arith.constant 0 : i32
    return %1, %c0_i32 : i32, i32
  }
  func.func @transform_1(%arg0: i32, %arg1: i32) -> (i32, i32) {
    %c1_i32 = arith.constant 1 : i32
    %0 = arith.muli %arg0, %c1_i32 : i32
    %1 = arith.addi %0, %arg1 : i32
    %c0_i32 = arith.constant 0 : i32
    %c0_i32_0 = arith.constant 0 : i32
    return %1, %c0_i32 : i32, i32
  }
  func.func @transform_2(%arg0: i32, %arg1: i32) -> (i32, i32) {
    %c1_i32 = arith.constant 1 : i32
    %0 = arith.muli %arg0, %c1_i32 : i32
    %1 = arith.addi %0, %arg1 : i32
    %c0_i32 = arith.constant 0 : i32
    %c0_i32_0 = arith.constant 0 : i32
    return %1, %c0_i32 : i32, i32
  }
  func.func @transform_3(%arg0: i32, %arg1: i32) -> (i32, i32) {
    %c0_i32 = arith.constant 0 : i32
    %c0_i32_0 = arith.constant 0 : i32
    return %arg0, %c0_i32 : i32, i32
  }
  func.func @transform_4(%arg0: i32, %arg1: i32) -> (i32, i32) {
    %c0_i32 = arith.constant 0 : i32
    %c0_i32_0 = arith.constant 0 : i32
    return %arg0, %c0_i32 : i32, i32
  }
}

</mosaic_0001>

<bundles_post_ra>
// kernel: tpu_custom_call.1
= control target key start
LH: loop header
LB: loop body
LE: loop exit
PB: predicated region body
PF: predicated region fallthrough
CT: control target
= control target key end

     0   :  { %10 = vsyncpa [#allocation3], 0  ;;  %s411_s0 = inlined_call_operand.hbm [shape: f32[16,128], index: 0, kind: input, shape index: {}]   ;;  %s412_s1 = inlined_call_operand.hbm [shape: f32[16,128], index: 1, kind: input, shape index: {}]   ;;  %s413_s2 = inlined_call_operand.hbm [shape: f32[16,128], index: 2, kind: input, shape index: {}]   ;;  %s414_s3 = inlined_call_operand.hbm [shape: f32[8,128], index: 3, kind: output, shape index: {0}]   ;;  %s415_s4 = inlined_call_operand.hbm [shape: f32[8,128], index: 4, kind: output, shape index: {1}]  }
   0x1   :  { %11 = vsyncpa [#allocation6], 0 }
   0x2   :  { %12 = vsyncpa [#allocation4], 0 }
   0x3   :  { %13 = vsyncpa [#allocation10], 0  ;;  %s302_s15 = smov [#allocation5]   ;;  %s303_s17 = smov [#allocation2]  }
   0x4   :  { %s39_s16 = sshll.u32 %s302_s15, 4  ;;  %s23_s18 = sshll.u32 %s303_s17, 4  ;;  %s40_s16 = int_to_ptr.vmem [resolvable:$true] %s39_s16  ;;  %s335_s18 = int_to_ptr.vmem [resolvable:$true] %s23_s18 }
   0x5   :  { %s184_s21 = scalar_lea.hbm %s412_s1, 256 }
   0x6   :  { %p185_p0 = scmp.ne.s32.totalorder %s412_s1, %s184_s21  ;;  %p188_p1 = scmp.lt.u32.totalorder %s184_s21, %s412_s1 }
   0x8   :  { %p190_p2 = pnand %p188_p1, %p185_p0 }
   0xa   :  { %193 = shalt.err (!%p190_p2)
}
   0xb   :  { %s194_s26 = scalar_lea.vmem %s40_s16, 256  ;;  %p199_p4 = scmp.lt.s32.totalorder %s40_s16, %s40_s16 }
   0xc   :  { %p195_p3 = scmp.ne.s32.totalorder %s40_s16, %s194_s26  ;;  %p200_p5 = scmp.lt.s32.totalorder %s194_s26, %s194_s26 }
   0xe   :  { %p201_p6 = por %p200_p5, %p199_p4 }
  0x10   :  { %p202_p7 = pnand %p201_p6, %p195_p3 }
  0x12   :  { %205 = shalt.err (!%p202_p7)
}
  0x13   :  { %s304_s27 = smov 128   ;;  %s305_s28 = smov 8  }
  0x14   :  { %45 = dma.hbm_to_vmem [thread:$0]  %s412_s1, 256, %s40_s16, [#allocation6], %s304_s27, %s304_s27, %s305_s28  }
  0x15   :  { %s206_s7 = scalar_lea.hbm %s411_s0, 256 }
  0x16   :  { %p207_p8 = scmp.ne.s32.totalorder %s411_s0, %s206_s7  ;;  %p210_p9 = scmp.lt.u32.totalorder %s206_s7, %s411_s0 }
  0x18   :  { %p212_p10 = pnand %p210_p9, %p207_p8 }
  0x1a   :  { %215 = shalt.err (!%p212_p10)
}
  0x1b   :  { %s216_s12 = scalar_lea.vmem %s335_s18, 256  ;;  %p221_p12 = scmp.lt.s32.totalorder %s335_s18, %s335_s18 }
  0x1c   :  { %p217_p11 = scmp.ne.s32.totalorder %s335_s18, %s216_s12  ;;  %p222_p13 = scmp.lt.s32.totalorder %s216_s12, %s216_s12 }
  0x1e   :  { %p223_p0 = por %p222_p13, %p221_p12 }
  0x20   :  { %p224_p1 = pnand %p223_p0, %p217_p11 }
  0x22   :  { %227 = shalt.err (!%p224_p1)
}
  0x23   :  { %29 = dma.hbm_to_vmem [thread:$0]  %s411_s0, 256, %s335_s18, [#allocation3], %s304_s27, %s304_s27, %s305_s28  }
  0x24   :  { %s306_s14 = smov [#allocation7]   ;;  %s228_s19 = scalar_lea.hbm %s413_s2, 256 }
  0x25   :  { %s55_s15 = sshll.u32 %s306_s14, 4  ;;  %p229_p2 = scmp.ne.s32.totalorder %s413_s2, %s228_s19  ;;  %s56_s15 = int_to_ptr.vmem [resolvable:$true] %s55_s15 }
  0x26   :  { %p232_p3 = scmp.lt.u32.totalorder %s228_s19, %s413_s2 }
  0x28   :  { %p234_p4 = pnand %p232_p3, %p229_p2 }
  0x2a   :  { %237 = shalt.err (!%p234_p4)
}
  0x2b   :  { %s238_s24 = scalar_lea.vmem %s56_s15, 256  ;;  %p243_p6 = scmp.lt.s32.totalorder %s56_s15, %s56_s15 }
  0x2c   :  { %p239_p5 = scmp.ne.s32.totalorder %s56_s15, %s238_s24  ;;  %p244_p7 = scmp.lt.s32.totalorder %s238_s24, %s238_s24 }
  0x2e   :  { %p245_p8 = por %p244_p7, %p243_p6 }
  0x30   :  { %p246_p9 = pnand %p245_p8, %p239_p5 }
  0x32   :  { %249 = shalt.err (!%p246_p9)
}
  0x33   :  { %61 = dma.hbm_to_vmem [thread:$0]  %s413_s2, 256, %s56_s15, [#allocation6], %s304_s27, %s304_s27, %s305_s28  }
  0x34   :  { %294 = dma.done.wait [#allocation3], 256  }
  0x35   :  { %295 = vsyncadd [#allocation3], 4294967040 }
  0x36   :  { %296 = dma.done.wait [#allocation6], 512  }
  0x37   :  { %297 = vsyncadd [#allocation6], 4294966784  ;;  %v83_v0 = vld [vmem:[#allocation2] sm:$0xff]  ;;  %v84_v1 = vld [vmem:[#allocation2 + $0x8] sm:$0xff]  ;;  %s307_s25 = smov [#allocation9]   ;;  %v308_v13 = vmov 1.0  }
  0x38   :  { %v85_v2 = vld [vmem:[#allocation5] sm:$0xff]  ;;  %v86_v3 = vld [vmem:[#allocation5 + $0x8] sm:$0xff]  ;;  %v87_v4 = vld [vmem:[#allocation7] sm:$0xff]  ;;  %s155_s26 = sshll.u32 %s307_s25, 4  ;;  %s156_s26 = int_to_ptr.vmem [resolvable:$true] %s155_s26 }
  0x39   :  { %v88_v5 = vld [vmem:[#allocation7 + $0x8] sm:$0xff]  ;;  %v89_v6 = vmul.f32 %v87_v4, %v83_v0  ;;  %v91_v8 = vmul.f32 %v87_v4, %v85_v2  ;;  %s250_s2 = scalar_lea.vmem %s156_s26, 128  ;;  %p255_p11 = scmp.lt.s32.totalorder %s156_s26, %s156_s26 }
  0x3a   :  { %v90_v7 = vmul.f32 %v88_v5, %v84_v1  ;;  %v92_v9 = vmul.f32 %v88_v5, %v86_v3  ;;  %v136_v10 = vadd.f32 %v88_v5, %v87_v4  ;;  %p251_p10 = scmp.ne.s32.totalorder %s156_s26, %s250_s2  ;;  %p256_p12 = scmp.lt.s32.totalorder %s250_s2, %s250_s2 }
  0x3b   :  { %vm93_vm0 = vcmp.eq.f32.partialorder %v91_v8, -1.0  ;;  %v97_v11 = vsub.f32 %v89_v6, %v91_v8 }
  0x3c   :  { %vm94_vm1 = vcmp.eq.f32.partialorder %v92_v9, -1.0  ;;  %v98_v12 = vsub.f32 %v90_v7, %v92_v9  ;;  %v95_v14 = vsel %vm93_vm0, 0.0, %v308_v13  ;;  %138 = vst [vmem:[#allocation9] sm:$0xff] %v136_v10  ;;  %p257_p13 = por %p256_p12, %p255_p11 }
  0x3d   :  { %v96_v15 = vsel %vm94_vm1, 0.0, %v308_v13  ;;  %v99_v16 = vmul.f32 %v97_v11, %v95_v14 }
  0x3e   :  { %v100_v17 = vmul.f32 %v98_v12, %v96_v15  ;;  %p258_p0 = pnand %p257_p13, %p251_p10 }
  0x3f   :  { %v101_v18 = vand.u32 2147483647, %v99_v16 }
  0x40   :  { %v102_v19 = vand.u32 2147483647, %v100_v17 }
  0x41   :  { %261 = shalt.err (!%p258_p0)
}
  0x42   :  { %s262_s29 = scalar_lea.hbm %s415_s4, 128 }
  0x43   :  { %p263_p1 = scmp.ne.s32.totalorder %s415_s4, %s262_s29  ;;  %p266_p2 = scmp.lt.u32.totalorder %s262_s29, %s415_s4 }
  0x45   :  { %p268_p3 = pnand %p266_p2, %p263_p1 }
  0x47   :  { %271 = shalt.err (!%p268_p3)
}
  0x48   :  { %158 = dma.vmem_to_hbm [thread:$0]  %s156_s26, 128, %s415_s4, [#allocation10]   ;;  %v105_v20 = vmul.f32 0.5, %v101_v18  ;;  %v106_v21 = vmul.f32 0.5, %v102_v19  ;;  %v169_v36 = vadd.f32 7.917595, %v101_v18 }
  0x49   :  { %vm103_vm4 = vcmp.lt.f32.partialorder %v101_v18, 10.0  ;;  %v170_v38 = vadd.f32 7.917595, %v102_v19  ;;  %vm104_vm5 = vcmp.lt.f32.partialorder %v102_v19, 10.0  ;;  %s309_s4 = smov [#allocation8]  }
  0x4a   :  { %v107_v22 = vadd.f32 1.0, %v105_v20  ;;  %v116_v23 = vadd.f32 1.0, %v106_v21  ;;  %v110_v24 = vmul.f32 -0.5, %v105_v20  ;;  %v119_v25 = vmul.f32 -0.5, %v106_v21  ;;  %s145_s10 = sshll.u32 %s309_s4, 4  ;;  %s146_s10 = int_to_ptr.vmem [resolvable:$true] %s145_s10 }
  0x4b   :  { %v113_v27 = vand.u32 2147483647, %v105_v20  ;;  %v122_v29 = vand.u32 2147483647, %v106_v21  ;;  %s272_s11 = scalar_lea.vmem %s146_s10, 128  ;;  %p277_p5 = scmp.lt.s32.totalorder %s146_s10, %s146_s10 }
  0x4c   :  { %180 = vlog2.f32 %v107_v22  ;;  %v111_v26 = vadd.f32 1.0, %v110_v24  ;;  %v120_v28 = vadd.f32 1.0, %v119_v25  ;;  %p273_p4 = scmp.ne.s32.totalorder %s146_s10, %s272_s11  ;;  %p278_p6 = scmp.lt.s32.totalorder %s272_s11, %s272_s11 }
  0x4d   :  { %182 = vlog2.f32 %v116_v23  ;;  %vm114_vm2 = vcmp.lt.f32.partialorder %v113_v27, 0.0004427343  ;;  %vm123_vm3 = vcmp.lt.f32.partialorder %v122_v29, 0.0004427343 }
  0x4e   :  { %v112_v30 = vmul.f32 %v111_v26, %v105_v20  ;;  %v121_v32 = vmul.f32 %v120_v28, %v106_v21  ;;  %p279_p7 = por %p278_p6, %p277_p5 }
  0x50   :  { %p280_p8 = pnand %p279_p7, %p273_p4 }
  0x56   :  { %v181_v31 = vpop.eup %180 }
  0x57   :  { %v183_v33 = vpop.eup %182  ;;  %v109_v34 = vmul.f32 0.6931472, %v181_v31 }
  0x58   :  { %v118_v35 = vmul.f32 0.6931472, %v183_v33 }
  0x59   :  { %v115_v37 = vsel %vm114_vm2, %v112_v30, %v109_v34 }
  0x5a   :  { %v124_v39 = vsel %vm123_vm3, %v121_v32, %v118_v35  ;;  %v125_v40 = vmul.f32 10.0, %v115_v37 }
  0x5b   :  { %v126_v41 = vmul.f32 10.0, %v124_v39 }
  0x5c   :  { %v129_v42 = vsel %vm103_vm4, %v125_v40, %v169_v36 }
  0x5d   :  { %v130_v43 = vsel %vm104_vm5, %v126_v41, %v170_v38 }
  0x5e   :  { %v132_v44 = vadd.f32 %v130_v43, %v129_v42 }
  0x60   :  { %134 = vst [vmem:[#allocation8] sm:$0xff] %v132_v44 }
  0x61   :  { %283 = shalt.err (!%p280_p8)
}
  0x62   :  { %s284_s13 = scalar_lea.hbm %s414_s3, 128 }
  0x63   :  { %p285_p9 = scmp.ne.s32.totalorder %s414_s3, %s284_s13  ;;  %p288_p10 = scmp.lt.u32.totalorder %s284_s13, %s414_s3 }
  0x65   :  { %p290_p11 = pnand %p288_p10, %p285_p9 }
  0x67   :  { %293 = shalt.err (!%p290_p11)
}
  0x68   :  { %148 = dma.vmem_to_hbm [thread:$0]  %s146_s10, 128, %s414_s3, [#allocation4]  }
  0x69   :  { %298 = dma.done.wait [#allocation4], 128  }
  0x6a   :  { %299 = vsyncadd [#allocation4], 4294967168 }
  0x6b   :  { %300 = dma.done.wait [#allocation10], 128  }
  0x6c   :  { %301 = vsyncadd [#allocation10], 4294967168 }
  0x6d   :  { %165 = vsyncpa [#allocation3], 1 }
  0x6e   :  { %166 = vsyncpa [#allocation6], 1 }
  0x6f   :  { %167 = vsyncpa [#allocation4], 1 }
  0x70   :  { %168 = vsyncpa [#allocation10], 1 }

</bundles_post_ra>
